<compile_context>
chip_gen: v5e
topology: v5e:2x2
jax: 0.10.0
libtpu: 0.0.40
codegen_flags: <defaults>
</compile_context>

<pallas_src>
import functools

import jax
import jax.numpy as jnp
from jax import lax
from jax.experimental import pallas as pl
from jax.experimental.pallas import tpu as pltpu


# ----------------------------------------------------------------------------
# Fused kernel: conv (single folded matmul) + [bias] + [InstanceNorm] + act
# ----------------------------------------------------------------------------
def _conv_block_kernel(*refs, oh, ow, ka, cs, activation, apply_norm, eps,
                       has_bias):
    """
    refs (has_bias=True ): x_ref, w_ref, b_ref, o_ref
    refs (has_bias=False): x_ref, w_ref,        o_ref
      x_ref : (1, Rp, Cp, cs)      bf16  space-to-depth'd, zero-padded NHWC map
      w_ref : (ka*ka*cs, ocb)      bf16  folded conv weight (lane-dense OC blk)
      b_ref : (1, ocb)             f32   bias (only when no InstanceNorm)
      o_ref : (1, oh*ow, ocb)      bf16  output block, channels on lanes
    """
    if has_bias:
        x_ref, w_ref, b_ref, o_ref = refs
    else:
        x_ref, w_ref, o_ref = refs
        b_ref = None

    x = x_ref[0]                                   # (Rp, Cp, cs), VMEM resident
    m = oh * ow

    # Build the (m, ka*ka*cs) patch slab with static unit-stride slices of the
    # VMEM-resident map, concatenated on the lane axis -> ONE deep-K MXU pass.
    taps = []
    for ki in range(ka):
        for kj in range(ka):
            taps.append(x[ki:ki + oh, kj:kj + ow, :].reshape(m, cs))
    patch = taps[0] if len(taps) == 1 else jnp.concatenate(taps, axis=-1)

    y = jnp.dot(patch, w_ref[...], preferred_element_type=jnp.float32)

    if has_bias:                                   # only when IN is off
        y = y + b_ref[...]

    if apply_norm:
        # InstanceNorm2d (no affine), biased variance, one pass of stats.
        inv_m = jnp.float32(1.0 / m)
        mean = jnp.sum(y, axis=0, keepdims=True) * inv_m
        ex2 = jnp.sum(y * y, axis=0, keepdims=True) * inv_m
        var = jnp.maximum(ex2 - mean * mean, 0.0)  # clamp f32 cancellation
        y = (y - mean) * lax.rsqrt(var + eps)      # rsqrt -> EUP slot

    if activation == "relu":
        y = jnp.maximum(y, 0.0)
    elif activation == "lrelu":
        y = jnp.where(y > 0, y, jnp.float32(0.2) * y)
    elif activation == "tanh":
        y = jnp.tanh(y)
    # 'no_act': identity

    o_ref[0] = y.astype(o_ref.dtype)


def _vmem_limit_bytes():
    # Default scoped VMEM is only 16 MiB (v5e) / 32 MiB (v6e/v7x); raise it
    # explicitly, leaving headroom under physical (128 MiB v5e/v6e, 64 MiB v7x).
    try:
        cap = int(getattr(pltpu.get_tpu_info(), "vmem_capacity_bytes",
                          128 << 20))
    except Exception:
        cap = 64 << 20
    return int(max(min(cap - (8 << 20), 100 << 20), 32 << 20))


# ----------------------------------------------------------------------------
# Wrapper: cheap layout plumbing + single fused pallas_call
# ----------------------------------------------------------------------------
def conv_block_forward(x, w, b, *, stride=2, padding=1, activation="relu",
                       batch_norm=True, eps=1e-5, out_dtype=jnp.float32,
                       out_layout="nchw"):
    """PyTorch ConvBlock.forward.  x: (N,C,H,W) f32, w: (OC,C,K,K), b: (OC,)."""
    N, C, H, W = x.shape
    OC, Cw, KH, KW = w.shape
    assert Cw == C and KH == KW, "square kernels only"
    k, s, p = KH, stride, padding
    OH = (H + 2 * p - k) // s + 1
    OW = (W + 2 * p - k) // s + 1
    ka = -(-k // s)                                 # taps per axis after s2d
    cs = s * s * C                                  # channels after s2d
    K = ka * ka * cs                                # folded contraction depth
    ocp = max(128, ((OC + 127) // 128) * 128)       # lane-dense output channels

    # OC-block grid axis (only kicks in for wide layers).
    if ocp <= 256:
        ocb = ocp
    elif ocp % 256 == 0:
        ocb = 256
    else:
        ocb = 128
    noc = ocp // ocb

    # --- input plumbing: NHWC + zero pad + space-to-depth (no im2col in HBM) ---
    xh = jnp.transpose(x, (0, 2, 3, 1))
    xh = jnp.pad(xh, ((0, 0), (p, p), (p, p), (0, 0)))
    Ht, Wt = s * (OH + ka - 1), s * (OW + ka - 1)
    xh = xh[:, :min(xh.shape[1], Ht), :min(xh.shape[2], Wt), :]
    xh = jnp.pad(xh, ((0, 0), (0, Ht - xh.shape[1]), (0, Wt - xh.shape[2]),
                      (0, 0)))
    rp, cp = Ht // s, Wt // s
    xs = (xh.reshape(N, rp, s, cp, s, C)
            .transpose(0, 1, 3, 2, 4, 5)
            .reshape(N, rp, cp, cs)
            .astype(jnp.bfloat16))

    # --- weight: (OC,C,k,k) -> pad spatially to ka*s -> (ka*ka*cs, ocp) folded ---
    wp = jnp.pad(w, ((0, 0), (0, 0), (0, ka * s - k), (0, ka * s - k)))
    ws = (wp.reshape(OC, C, ka, s, ka, s)
            .transpose(2, 4, 3, 5, 1, 0)
            .reshape(ka, ka, cs, OC))
    ws = jnp.pad(ws, ((0, 0), (0, 0), (0, 0), (0, ocp - OC)))
    ws = ws.reshape(K, ocp).astype(jnp.bfloat16)

    has_bias = not batch_norm        # IN (no affine) cancels a per-channel bias
    m = OH * OW

    kernel = functools.partial(
        _conv_block_kernel, oh=OH, ow=OW, ka=ka, cs=cs,
        activation=activation, apply_norm=batch_norm, eps=eps,
        has_bias=has_bias)

    in_specs = [
        pl.BlockSpec((1, rp, cp, cs), lambda n, j: (n, 0, 0, 0)),
        pl.BlockSpec((K, ocb), lambda n, j: (0, j)),
    ]
    operands = [xs, ws]
    if has_bias:
        bp = jnp.pad(b.astype(jnp.float32), (0, ocp - OC)).reshape(1, ocp)
        in_specs.append(pl.BlockSpec((1, ocb), lambda n, j: (0, j)))
        operands.append(bp)

    out = pl.pallas_call(
        kernel,
        out_shape=jax.ShapeDtypeStruct((N, m, ocp), jnp.bfloat16),
        grid=(N, noc),
        in_specs=in_specs,
        out_specs=pl.BlockSpec((1, m, ocb), lambda n, j: (n, 0, j)),
        compiler_params=pltpu.CompilerParams(
            dimension_semantics=("parallel", "parallel"),
            vmem_limit_bytes=_vmem_limit_bytes()),
    )(*operands)

    # Boundary plumbing only: drop padded channels, pick layout/dtype.
    nhwc = out[:, :, :OC].reshape(N, OH, OW, OC)
    if out_layout == "nhwc":                       # for chained ConvBlocks
        return nhwc.astype(out_dtype)
    return nhwc.transpose(0, 3, 1, 2).astype(out_dtype)


# ----------------------------------------------------------------------------
# Pure-JAX reference (for correctness check)
# ----------------------------------------------------------------------------
def _conv_block_ref(x, w, b, *, stride, padding, activation, batch_norm,
                    eps=1e-5):
    out = lax.conv_general_dilated(
        x, w, (stride, stride), [(padding, padding)] * 2,
        dimension_numbers=("NCHW", "OIHW", "NCHW"))
    out = out + b[None, :, None, None]
    if batch_norm:
        mean = jnp.mean(out, axis=(2, 3), keepdims=True)
        var = jnp.mean(jnp.square(out - mean), axis=(2, 3), keepdims=True)
        out = (out - mean) * lax.rsqrt(var + eps)
    if activation == "relu":
        out = jnp.maximum(out, 0.0)
    elif activation == "lrelu":
        out = jnp.where(out > 0, out, 0.2 * out)
    elif activation == "tanh":
        out = jnp.tanh(out)
    return out


if __name__ == "__main__":
    key = jax.random.PRNGKey(0)
    kx, kw, kb, kw2, kb2 = jax.random.split(key, 5)

    # Tolerance covers the deliberate bf16 MXU-input + bf16-writeback deviation
    # from PyTorch's f32 path.
    TOL = 7.5e-2

    # ConvBlock(4, 8, kernel_size=3, stride=2, padding=1, 'relu', batch_norm=True)
    N, C, H, W, OC = 2, 4, 16, 16, 8
    x = jax.random.normal(kx, (N, C, H, W), jnp.float32)
    w = 0.1 * jax.random.normal(kw, (OC, C, 3, 3), jnp.float32)
    b = 0.1 * jax.random.normal(kb, (OC,), jnp.float32)

    fwd = jax.jit(functools.partial(conv_block_forward, stride=2, padding=1,
                                    activation="relu", batch_norm=True))
    out = jax.block_until_ready(fwd(x, w, b))
    ref = _conv_block_ref(x, w, b, stride=2, padding=1,
                          activation="relu", batch_norm=True)
    assert out.shape == (N, OC, H // 2, W // 2), out.shape
    assert bool(jnp.all(jnp.isfinite(out)))
    assert float(jnp.max(jnp.abs(out - ref))) < TOL, "mismatch vs reference (cfg1)"

    # ConvBlock(4, 8, kernel_size=3, stride=1, padding=1, 'tanh', batch_norm=False)
    w2 = 0.1 * jax.random.normal(kw2, (OC, C, 3, 3), jnp.float32)
    b2 = 0.1 * jax.random.normal(kb2, (OC,), jnp.float32)
    fwd2 = jax.jit(functools.partial(conv_block_forward, stride=1, padding=1,
                                     activation="tanh", batch_norm=False))
    out2 = jax.block_until_ready(fwd2(x, w2, b2))
    ref2 = _conv_block_ref(x, w2, b2, stride=1, padding=1,
                           activation="tanh", batch_norm=False)
    assert out2.shape == (N, OC, H, W), out2.shape
    assert bool(jnp.all(jnp.isfinite(out2)))
    assert float(jnp.max(jnp.abs(out2 - ref2))) < TOL, "mismatch vs reference (cfg2)"

    print("KERNEL_OK")
</pallas_src>

<mosaic_0001>
module attributes {stable_mosaic.version = 11 : i64} {
  func.func @_conv_block_kernel(%arg0: i32, %arg1: i32, %arg2: memref<1x9x9x16xbf16, #tpu.memory_space<vmem>>, %arg3: memref<64x128xbf16, #tpu.memory_space<vmem>>, %arg4: memref<1x64x128xbf16, #tpu.memory_space<vmem>>) attributes {dimension_semantics = [#tpu.dimension_semantics<parallel>, #tpu.dimension_semantics<parallel>], iteration_bounds = array<i64: 2, 1>, scalar_prefetch = 0 : i64, scratch_operands = 0 : i64, tpu.core_type = #tpu.core_type<tc>, window_params = [{transform_indices = @transform_0, window_bounds = array<i64: 1, 9, 9, 16>}, {transform_indices = @transform_1, window_bounds = array<i64: 64, 128>}, {transform_indices = @transform_2, window_bounds = array<i64: 1, 64, 128>}]} {
    %c0 = arith.constant 0 : index
    %c0_0 = arith.constant 0 : index
    %c0_1 = arith.constant 0 : index
    %c0_2 = arith.constant 0 : index
    %0 = vector.load %arg2[%c0, %c0_0, %c0_1, %c0_2] : memref<1x9x9x16xbf16, #tpu.memory_space<vmem>>, vector<1x9x9x16xbf16>
    %1 = vector.shape_cast %0 : vector<1x9x9x16xbf16> to vector<9x9x16xbf16>
    %2 = vector.extract_strided_slice %1 {offsets = [0, 0, 0], sizes = [8, 8, 16], strides = [1, 1, 1]} : vector<9x9x16xbf16> to vector<8x8x16xbf16>
    %3 = vector.shape_cast %2 : vector<8x8x16xbf16> to vector<64x16xbf16>
    %4 = vector.extract_strided_slice %1 {offsets = [0, 1, 0], sizes = [8, 8, 16], strides = [1, 1, 1]} : vector<9x9x16xbf16> to vector<8x8x16xbf16>
    %5 = vector.shape_cast %4 : vector<8x8x16xbf16> to vector<64x16xbf16>
    %6 = vector.extract_strided_slice %1 {offsets = [1, 0, 0], sizes = [8, 8, 16], strides = [1, 1, 1]} : vector<9x9x16xbf16> to vector<8x8x16xbf16>
    %7 = vector.shape_cast %6 : vector<8x8x16xbf16> to vector<64x16xbf16>
    %8 = vector.extract_strided_slice %1 {offsets = [1, 1, 0], sizes = [8, 8, 16], strides = [1, 1, 1]} : vector<9x9x16xbf16> to vector<8x8x16xbf16>
    %9 = vector.shape_cast %8 : vector<8x8x16xbf16> to vector<64x16xbf16>
    %10 = tpu.concatenate %3, %5, %7, %9 in 1 : vector<64x16xbf16>, vector<64x16xbf16>, vector<64x16xbf16>, vector<64x16xbf16> -> vector<64x64xbf16>
    %c0_3 = arith.constant 0 : index
    %c0_4 = arith.constant 0 : index
    %11 = vector.load %arg3[%c0_3, %c0_4] : memref<64x128xbf16, #tpu.memory_space<vmem>>, vector<64x128xbf16>
    %cst = arith.constant dense<0.000000e+00> : vector<64x128xf32>
    %12 = tpu.matmul %10, %11, %cst {dimension_numbers = #tpu.dot_dimension_numbers<[1], [0], [0], [1], [0, 0, 1, 1], [], []>} : vector<64x64xbf16>, vector<64x128xbf16>, vector<64x128xf32> -> vector<64x128xf32>
    %cst_5 = arith.constant dense<0.000000e+00> : vector<128xf32>
    %13 = vector.multi_reduction <add>, %12, %cst_5 [0] : vector<64x128xf32> to vector<128xf32>
    %14 = vector.shape_cast %13 : vector<128xf32> to vector<1x128xf32>
    %cst_6 = arith.constant 1.562500e-02 : f32
    %15 = vector.broadcast %cst_6 : f32 to vector<1x128xf32>
    %16 = arith.mulf %14, %15 : vector<1x128xf32>
    %17 = arith.mulf %12, %12 : vector<64x128xf32>
    %cst_7 = arith.constant dense<0.000000e+00> : vector<128xf32>
    %18 = vector.multi_reduction <add>, %17, %cst_7 [0] : vector<64x128xf32> to vector<128xf32>
    %19 = vector.shape_cast %18 : vector<128xf32> to vector<1x128xf32>
    %cst_8 = arith.constant 1.562500e-02 : f32
    %20 = vector.broadcast %cst_8 : f32 to vector<1x128xf32>
    %21 = arith.mulf %19, %20 : vector<1x128xf32>
    %22 = arith.mulf %16, %16 : vector<1x128xf32>
    %23 = arith.subf %21, %22 : vector<1x128xf32>
    %cst_9 = arith.constant 0.000000e+00 : f32
    %24 = vector.broadcast %cst_9 : f32 to vector<1x128xf32>
    %25 = arith.maximumf %23, %24 : vector<1x128xf32>
    %26 = vector.broadcast %16 : vector<1x128xf32> to vector<64x128xf32>
    %27 = arith.subf %12, %26 : vector<64x128xf32>
    %cst_10 = arith.constant 9.99999974E-6 : f32
    %28 = vector.broadcast %cst_10 : f32 to vector<1x128xf32>
    %29 = arith.addf %25, %28 : vector<1x128xf32>
    %30 = math.rsqrt %29 : vector<1x128xf32>
    %31 = vector.broadcast %30 : vector<1x128xf32> to vector<64x128xf32>
    %32 = arith.mulf %27, %31 : vector<64x128xf32>
    %cst_11 = arith.constant 0.000000e+00 : f32
    %33 = vector.broadcast %cst_11 : f32 to vector<64x128xf32>
    %34 = arith.maximumf %32, %33 : vector<64x128xf32>
    %35 = arith.truncf %34 : vector<64x128xf32> to vector<64x128xbf16>
    %c0_12 = arith.constant 0 : index
    %c0_13 = arith.constant 0 : index
    %c0_14 = arith.constant 0 : index
    %36 = vector.load %arg4[%c0_12, %c0_13, %c0_14] : memref<1x64x128xbf16, #tpu.memory_space<vmem>>, vector<1x64x128xbf16>
    %37 = vector.shape_cast %36 : vector<1x64x128xbf16> to vector<64x128xbf16>
    %38 = vector.shape_cast %35 : vector<64x128xbf16> to vector<1x64x128xbf16>
    tpu.vector_store %arg4[%c0_12, %c0_13, %c0_14], %38 {strides = array<i32>} : memref<1x64x128xbf16, #tpu.memory_space<vmem>>, vector<1x64x128xbf16>,
    return
  }
  func.func @transform_0(%arg0: i32, %arg1: i32) -> (i32, i32, i32, i32) {
    %c0_i32 = arith.constant 0 : i32
    %c0_i32_0 = arith.constant 0 : i32
    %c0_i32_1 = arith.constant 0 : i32
    %c0_i32_2 = arith.constant 0 : i32
    return %arg0, %c0_i32, %c0_i32_0, %c0_i32_1 : i32, i32, i32, i32
  }
  func.func @transform_1(%arg0: i32, %arg1: i32) -> (i32, i32) {
    %c0_i32 = arith.constant 0 : i32
    %c0_i32_0 = arith.constant 0 : i32
    return %c0_i32, %arg1 : i32, i32
  }
  func.func @transform_2(%arg0: i32, %arg1: i32) -> (i32, i32, i32) {
    %c0_i32 = arith.constant 0 : i32
    %c0_i32_0 = arith.constant 0 : i32
    return %arg0, %c0_i32, %arg1 : i32, i32, i32
  }
}

</mosaic_0001>

<bundles_post_ra>
// kernel: conv_block_forward.1
= control target key start
LH: loop header
LB: loop body
LE: loop exit
PB: predicated region body
PF: predicated region fallthrough
CT: control target
= control target key end

     0   :  { %s823_s9 = smov 0   ;;  %s825_s10 = smov 0   ;;  %s1018_s0 = inlined_call_operand.vmem [shape: bf16[2,9,9,16], index: 0, kind: input, shape index: {}]   ;;  %s1019_s1 = inlined_call_operand.vmem [shape: bf16[64,128], index: 1, kind: input, shape index: {}]   ;;  %s1020_s2 = inlined_call_operand.vmem [shape: bf16[2,64,128], index: 2, kind: output, shape index: {}]  }
   0x1   :  { %s827_s11 = smov 0  }
   0x2 LB: > { %s24_s12 = sadd.s32 1, %s799_s10  ;;  %p685_p0 = scmp.ge.s32.totalorder %s803_s11, 1  ;;  %s803_s11 = sphi %s827_s11, %s12_s11   ;;  %s799_s10 = sphi %s825_s10, %s1024_s10   ;;  %s795_s9 = sphi %s823_s9, %s1023_s9  }
   0x3   : > { %p26_p1 = scmp.ge.s32.totalorder %s24_s12, 2  ;;  %p135_p2 = scmp.lt.s32.totalorder %s803_s11, 3 }
   0x5   : > { %s1026_s12 = smov (%p26_p1, %s24_s12), 0  ;;  %p136_p3 = pnand %p685_p0, %p135_p2 }
   0x6   : > { %p164_p4 = scmp.lt.s32.totalorder (!%p136_p3), %s795_s9, 1  ;;  %s805_s17 = smov (!%p136_p3), 32  }
   0x7   : > { %139 = sbr.rel (%p136_p3) target bundleno = 363 (0x16b), region = 28  ;;  %s806_s18 = smov (!%p136_p3), 16  }
   0x8   : > { %s807_s19 = smov (!%p136_p3), 48  }
   0xc   : > { %s1028_s9 = smov (!%p164_p4, %s795_s9), 1  ;;  %vm200_vm0 = vsmask.f32 3328  ;;  %vm201_vm1 = vsmask.f32 7440  ;;  %v713_v48 = vld [vmem:[%s1019_s1 + $0x8] sm:$0xff] }
   0xd   : > { %s751_s13 = smul.u32 72, %s1028_s9  ;;  %vm886_vm2 = vmor %vm200_vm0, %vm201_vm1  ;;  %vm396_vm3 = vcmask 130048   ;;  %vm418_vm4 = vcmask 392192   ;;  %vm409_vm5 = vcmask 261120   ;;  %vm459_vm6 = vcmask 523264   ;;  %s711_s28 = sshll.u32 %s1028_s9, 5 }
   0xe   : > { %s180_s3 = scalar_lea.vmem %s1020_s2, %s711_s28 }
   0xf   : > { %s847_s16 = scalar_lea.vmem %s1018_s0, %s751_s13 }
  0x10   : > { %v188_v0 = vld [vmem:[%s847_s16 + $0x18] sm:$0xf]  ;;  %v851_v1 = vld [vmem:[%s847_s16 + $0x20] sm:$0xf]  ;;  %v184_v2 = vld [vmem:[%s847_s16 + $0x8] sm:$0xf] }
  0x11   : > { %v260_v3 = vshrl.u32 %v851_v1, 16  ;;  %v263_v4 = vshll.u32 %v851_v1, 16  ;;  %v340_v5 = vunpack.c.l.b16 %v188_v0  ;;  %v341_v6 = vunpack.c.l.b16 %v851_v1  ;;  %v186_v7 = vld [vmem:[%s847_s16 + $0x10] sm:$0xf]  ;;  %v182_v12 = vld [vmem:[%s847_s16] sm:$0xf] }
  0x12   : > { %v246_v8 = vshrl.u32 %v188_v0, 16  ;;  %v249_v9 = vshll.u32 %v188_v0, 16  ;;  %v232_v10 = vshrl.u32 %v186_v7, 16  ;;  %v235_v11 = vshll.u32 %v186_v7, 16  ;;  %v191_v25 = vld [vmem:[%s847_s16 + $0x24] sm:$0x1] }
  0x13   : > { %v262_v13 = vrot.slane %v260_v3, 4  ;;  %v265_v14 = vrot.slane %v263_v4, 5  ;;  %v372_v15 = vpack.c.b16 %v341_v6, %v340_v5  ;;  %v338_v16 = vunpack.c.l.b16 %v184_v2  ;;  %v192_v30 = vld [vmem:[%s847_s16 + $0x28] sm:$0xf]  ;;  %v193_v31 = vld [vmem:[%s847_s16 + $0x2c] sm:$0x1] }
  0x14   : > { %v861_v17 = vrot.slane %v246_v8, 4  ;;  %v863_v18 = vrot.slane %v249_v9, 5  ;;  %v865_v19 = vrot.slane %v232_v10, 4  ;;  %v867_v20 = vrot.slane %v235_v11, 5  ;;  %v183_v36 = vld [vmem:[%s847_s16 + $0x4] sm:$0x1] }
  0x15   : > { %v266_v21 = vor.u32 %v265_v14, %v262_v13  ;;  %377 = vrot.lane.b32.xlu1 %v372_v15, %s805_s17  ;;  %v339_v22 = vunpack.c.l.b16 %v186_v7  ;;  %v204_v23 = vshrl.u32 %v182_v12, 16  ;;  %v207_v24 = vshll.u32 %v182_v12, 16  ;;  %v185_v45 = vld [vmem:[%s847_s16 + $0xc] sm:$0x1]  ;;  %v194_v51 = vld [vmem:[%s847_s16 + $0x30] sm:$0xf] }
  0x16   : > { %v252_v26 = vor.u32 %v863_v18, %v861_v17  ;;  %v238_v27 = vor.u32 %v867_v20, %v865_v19  ;;  %v218_v28 = vshrl.u32 %v184_v2, 16  ;;  %v221_v29 = vshll.u32 %v184_v2, 16  ;;  %v894_v62 = vld [vmem:[%s847_s16 + $0x38] sm:$0xf]  ;;  %v187_v15 = vld [vmem:[%s847_s16 + $0x14] sm:$0x1] }
  0x17   : > { %v877_v32 = vpack.c.b16 %v340_v5, %v339_v22  ;;  %v371_v33 = vpack.c.b16 %v339_v22, %v338_v16  ;;  %v206_v34 = vrot.slane %v204_v23, 4  ;;  %v209_v35 = vrot.slane %v207_v24, 5  ;;  %v195_v24 = vld [vmem:[%s847_s16 + $0x34] sm:$0x1]  ;;  %v199_v17 = vld [vmem:[%s847_s16 + $0x44] sm:$0x1] }
  0x18   : > { %v220_v37 = vrot.slane %v218_v28, 4  ;;  %v223_v38 = vrot.slane %v221_v29, 5  ;;  %v337_v39 = vunpack.c.l.b16 %v182_v12  ;;  %v267_v40 = vrot.slane %v266_v21, 4 }
  0x19   : > { %375 = vrot.lane.b32.xlu0 %v371_v33, %s805_s17  ;;  %v269_v41 = vshll.u32 %v191_v25, 16  ;;  %v274_v42 = vshrl.u32 %v192_v30, 16  ;;  %v277_v43 = vshll.u32 %v192_v30, 16  ;;  %v283_v44 = vshll.u32 %v193_v31, 16  ;;  %v189_v33 = vld [vmem:[%s847_s16 + $0x1c] sm:$0x1] }
  0x1a   : > { %v224_v46 = vor.u32 %v223_v38, %v220_v37  ;;  %v882_v47 = vpack.c.b16 %v338_v16, %v337_v39  ;;  %v210_v49 = vor.u32 %v209_v35, %v206_v34  ;;  %v213_v50 = vshll.u32 %v183_v36, 16 }
  0x1b   : > { %v271_v52 = vrot.slane %v269_v41, 5  ;;  %v276_v53 = vrot.slane %v274_v42, 4  ;;  %v279_v54 = vrot.slane %v277_v43, 5  ;;  %v285_v55 = vrot.slane %v283_v44, 5  ;;  %v198_v41 = vld [vmem:[%s847_s16 + $0x40] sm:$0xf] }
  0x1c   : > { %v211_v56 = vrot.slane %v210_v49, 4  ;;  %v215_v57 = vrot.slane %v213_v50, 5  ;;  %v225_v58 = vrot.slane %v224_v46, 4  ;;  %v227_v59 = vshll.u32 %v185_v45, 16  ;;  %v197_v42 = vld [vmem:[%s847_s16 + $0x3c] sm:$0x1] }
  0x1d   : > { %v272_v60 = vsel %vm886_vm2, %v267_v40, %v271_v52  ;;  %v280_v61 = vor.u32 %v279_v54, %v276_v53  ;;  %v288_v63 = vshrl.u32 %v194_v51, 16  ;;  %v291_v0 = vshll.u32 %v194_v51, 16 }
  0x1e   : > { %v896_v2 = vunpack.c.l.b16 %v272_v60  ;;  %v216_v3 = vsel %vm886_vm2, %v211_v56, %v215_v57  ;;  %v229_v4 = vrot.slane %v227_v59, 5  ;;  %v302_v5 = vshrl.u32 %v894_v62, 16 }
  0x1f   : > { %v281_v7 = vrot.slane %v280_v61, 4  ;;  %v349_v8 = vunpack.c.l.b16 %v216_v3  ;;  %v290_v9 = vrot.slane %v288_v63, 4  ;;  %v293_v10 = vrot.slane %v291_v0, 5 }
  0x20   : > { %v230_v11 = vsel %vm886_vm2, %v225_v58, %v229_v4  ;;  %v304_v12 = vrot.slane %v302_v5, 4  ;;  %v305_v13 = vshll.u32 %v894_v62, 16  ;;  %v342_v14 = vunpack.c.l.b16 %v192_v30 }
  0x21   : > { %v286_v16 = vsel %vm886_vm2, %v281_v7, %v285_v55  ;;  %v350_v21 = vunpack.c.l.b16 %v230_v11  ;;  %v294_v22 = vor.u32 %v293_v10, %v290_v9  ;;  %v343_v23 = vunpack.c.l.b16 %v194_v51 }
  0x22   : > { %v354_v25 = vunpack.c.l.b16 %v286_v16  ;;  %v307_v28 = vrot.slane %v305_v13, 5  ;;  %v344_v29 = vunpack.c.l.b16 %v894_v62  ;;  %v911_v31 = vpack.c.b16 %v342_v14, %v341_v6  ;;  %v712_v13 = vld [vmem:[%s1019_s1] sm:$0xff] }
  0x23   : > { %v357_v30 = vpack.c.b16 %v350_v21, %v349_v8  ;;  %v373_v34 = vpack.c.b16 %v343_v23, %v342_v14  ;;  %v239_v35 = vrot.slane %v238_v27, 4  ;;  %v241_v36 = vshll.u32 %v187_v15, 16 }
  0x24   : > { %v359_v37 = vpack.c.b16 %v354_v25, %v896_v2  ;;  %v918_v38 = vpack.c.b16 %v344_v29, %v343_v23  ;;  %v295_v39 = vrot.slane %v294_v22, 4  ;;  %v297_v40 = vshll.u32 %v195_v24, 16 }
  0x25   : > { %361 = vrot.lane.b32.xlu0 %v357_v30, %s806_s18  ;;  %379 = vrot.lane.b32.xlu2 %v373_v34, %s805_s17  ;;  %v243_v1 = vrot.slane %v241_v36, 5  ;;  %v253_v6 = vrot.slane %v252_v26, 4  ;;  %v255_v19 = vshll.u32 %v189_v33, 16  ;;  %v316_v20 = vshrl.u32 %v198_v41, 16 }
  0x26   : > { %365 = vrot.lane.b32.xlu1 %v359_v37, %s806_s18  ;;  %v299_v27 = vrot.slane %v297_v40, 5  ;;  %v319_v43 = vshll.u32 %v198_v41, 16  ;;  %v308_v44 = vor.u32 %v307_v28, %v304_v12  ;;  %v311_v50 = vshll.u32 %v197_v42, 16  ;;  %v715_v12 = vld [vmem:[%s1019_s1 + $0x18] sm:$0xff] }
  0x27   : > { %v244_v45 = vsel %vm886_vm2, %v239_v35, %v243_v1  ;;  %v257_v46 = vrot.slane %v255_v19, 5  ;;  %v318_v49 = vrot.slane %v316_v20, 4  ;;  %v325_v61 = vshll.u32 %v199_v17, 16  ;;  %472 = vmatpush.bf16.msra.mxu0 %v715_v12  ;;  %740 = vmatpush.bf16.msra.mxu2 %v715_v12 }
  0x28   : > { %v351_v51 = vunpack.c.l.b16 %v244_v45  ;;  %v300_v52 = vsel %vm886_vm2, %v295_v39, %v299_v27  ;;  %v321_v53 = vrot.slane %v319_v43, 5  ;;  %v309_v54 = vrot.slane %v308_v44, 4  ;;  %739 = vmatpush.bf16.msra.mxu1 %v715_v12  ;;  %741 = vmatpush.bf16.msra.mxu3 %v715_v12 }
  0x29   : > { %v355_v18 = vunpack.c.l.b16 %v300_v52  ;;  %v258_v26 = vsel %vm886_vm2, %v253_v6, %v257_v46  ;;  %v313_v55 = vrot.slane %v311_v50, 5  ;;  %v370_v63 = vunpack.c.l.b16 %v198_v41 }
  0x2a   : > { %v384_v56 = vpack.c.b16 %v351_v51, %v350_v21  ;;  %v352_v57 = vunpack.c.l.b16 %v258_v26  ;;  %v322_v60 = vor.u32 %v321_v53, %v318_v49  ;;  %v327_v4 = vrot.slane %v325_v61, 5 }
  0x2b   : > { %v386_v58 = vpack.c.b16 %v355_v18, %v354_v25  ;;  %v314_v59 = vsel %vm886_vm2, %v309_v54, %v313_v55  ;;  %v374_v7 = vpack.c.b16 %v370_v63, %v344_v29 }
  0x2c   : > { %v358_v62 = vpack.c.b16 %v352_v57, %v351_v51  ;;  %v356_v0 = vunpack.c.l.b16 %v314_v59  ;;  %v323_v3 = vrot.slane %v322_v60, 4  ;;  %v385_v5 = vpack.c.b16 %v896_v2, %v352_v57  ;;  %v714_v2 = vld [vmem:[%s1019_s1 + $0x10] sm:$0xff] }
  0x2d   : > { %392 = vrot.lane.b32.xlu0 %v386_v58, %s807_s19  ;;  %473 = vmatpush.bf16.msra.mxu0 %v714_v2 }
  0x2e   : > { %388 = vrot.lane.b32.xlu1 %v384_v56, %s807_s19  ;;  %363 = vrot.lane.b32.xlu2 %v358_v62, %s806_s18  ;;  %v360_v8 = vpack.c.b16 %v356_v0, %v355_v18  ;;  %v328_v9 = vsel %vm886_vm2, %v323_v3, %v327_v4 }
  0x2f   : > { %v383_v10 = vunpack.c.l.b16 %v328_v9  ;;  %743 = vmatpush.bf16.msra.mxu2 %v714_v2  ;;  %742 = vmatpush.bf16.msra.mxu1 %v714_v2 }
  0x30   : > { %744 = vmatpush.bf16.msra.mxu3 %v714_v2 }
  0x31   : > { %v387_v11 = vpack.c.b16 %v383_v10, %v356_v0  ;;  %474 = vmatpush.bf16.msra.mxu0 %v713_v48 }
  0x33   : > { %746 = vmatpush.bf16.msra.mxu2 %v713_v48  ;;  %745 = vmatpush.bf16.msra.mxu1 %v713_v48 }
  0x34   : > { %747 = vmatpush.bf16.msra.mxu3 %v713_v48 }
  0x35   : > { %390 = vrot.lane.b32.xlu0 %v385_v5, %s807_s19  ;;  %475 = vmatpush.bf16.msra.mxu0 %v712_v13 }
  0x36   : > { %381 = vrot.lane.b32.xlu1 %v374_v7, %s805_s17  ;;  %367 = vrot.lane.b32.xlu2 %v360_v8, %s806_s18 }
  0x37   : > { %749 = vmatpush.bf16.msra.mxu2 %v712_v13  ;;  %748 = vmatpush.bf16.msra.mxu1 %v712_v13 }
  0x38   : > { %750 = vmatpush.bf16.msra.mxu3 %v712_v13 }
  0x3e   : > { %394 = vrot.lane.b32.xlu2 %v387_v11, %s807_s19 }
  0x7f   : > { %v380_v14 = vpop.permute.xlu2 %379 }
  0x87   : > { %v378_v16 = vpop.permute.xlu1 %377 }
  0x88   : > { %v364_v21 = vpop.permute.xlu2 %363 }
  0x8b   : > { %v376_v15 = vpop.permute.xlu0 %375 }
  0x90   : > { %v368_v28 = vpop.permute.xlu2 %367 }
  0x91   : > { %v408_v40 = vsel %vm396_vm3, %v918_v38, %v368_v28 }
  0x97   : > { %v362_v22 = vpop.permute.xlu0 %361 }
  0x98   : > { %v366_v23 = vpop.permute.xlu1 %365  ;;  %v399_v25 = vsel %vm396_vm3, %v882_v47, %v362_v22  ;;  %v402_v47 = vsel %vm396_vm3, %v877_v32, %v364_v21  ;;  %v395_v37 = vpop.permute.xlu2 %394 }
  0x99   : > { %v405_v24 = vsel %vm396_vm3, %v911_v31, %v366_v23  ;;  %v411_v34 = vsel %vm409_vm5, %v399_v25, %v376_v15  ;;  %v413_v39 = vsel %vm409_vm5, %v402_v47, %v378_v16 }
  0x9a   : > { %v415_v33 = vsel %vm409_vm5, %v405_v24, %v380_v14 }
  0x9f   : > { %v393_v29 = vpop.permute.xlu0 %392 }
  0xa0   : > { %v389_v30 = vpop.permute.xlu1 %388  ;;  %v424_v35 = vsel %vm418_vm4, %v415_v33, %v393_v29 }
  0xa1   : > { %v420_v36 = vsel %vm418_vm4, %v411_v34, %v389_v30  ;;  %707 = vmatmul.msk.bf16.vlgmr.msra.gmra.mxu2 %vm459_vm6, %v424_v35 }
  0xa2   : > { %705 = vmatmul.msk.bf16.vlgmr.msra.gmra.mxu0 %vm459_vm6, %v420_v36 }
  0xa7   : > { %v391_v31 = vpop.permute.xlu0 %390 }
  0xa8   : > { %v382_v41 = vpop.permute.xlu1 %381  ;;  %v422_v42 = vsel %vm418_vm4, %v413_v39, %v391_v31 }
  0xa9   : > { %v417_v1 = vsel %vm409_vm5, %v408_v40, %v382_v41  ;;  %706 = vmatmul.msk.bf16.vlgmr.msra.gmra.mxu1 %vm459_vm6, %v422_v42 }
  0xaa   : > { %v426_v6 = vsel %vm418_vm4, %v417_v1, %v395_v37 }
  0xab   : > { %708 = vmatmul.msk.bf16.vlgmr.msra.gmra.mxu3 %vm459_vm6, %v426_v6 }
 0x11f   : > { %v975_v19 = vpop.f32.mrf.mxu0 }
 0x120   : > { %v511_v43 = vmul.f32 %v975_v19, %v975_v19 }
 0x124   : > { %v977_v32 = vpop.f32.mrf.mxu2 }
 0x125   : > { %v515_v26 = vmul.f32 %v977_v32, %v977_v32 }
 0x126   : > { %v979_v20 = vpop.f32.mrf.mxu1 }
 0x127   : > { %v981_v27 = vpop.f32.mrf.mxu0  ;;  %v513_v49 = vmul.f32 %v979_v20, %v979_v20 }
 0x128   : > { %v512_v38 = vmul.f32 %v981_v27, %v981_v27  ;;  %v497_v44 = vadd.f32 %v981_v27, %v975_v19 }
 0x12a   : > { %v519_v45 = vadd.f32 %v512_v38, %v511_v43  ;;  %v498_v46 = vadd.f32 %v497_v44, %v979_v20 }
 0x12c   : > { %v520_v52 = vadd.f32 %v519_v45, %v513_v49  ;;  %v489_v18 = vpop.f32.mrf.mxu2 }
 0x12d   : > { %v516_v56 = vmul.f32 %v489_v18, %v489_v18 }
 0x12e   : > { %v992_v50 = vpop.f32.mrf.mxu3  ;;  %v484_v51 = vpop.f32.mrf.mxu1 }
 0x12f   : > { %v499_v53 = vadd.f32 %v498_v46, %v484_v51  ;;  %v514_v17 = vmul.f32 %v484_v51, %v484_v51  ;;  %v517_v59 = vmul.f32 %v992_v50, %v992_v50 }
 0x131   : > { %v500_v54 = vadd.f32 %v499_v53, %v977_v32  ;;  %v521_v55 = vadd.f32 %v520_v52, %v514_v17 }
 0x133   : > { %v522_v57 = vadd.f32 %v521_v55, %v515_v26  ;;  %v501_v58 = vadd.f32 %v500_v54, %v489_v18 }
 0x135   : > { %v502_v60 = vadd.f32 %v501_v58, %v992_v50  ;;  %v523_v61 = vadd.f32 %v522_v57, %v516_v56 }
 0x136   : > { %v494_v62 = vpop.f32.mrf.mxu3 }
 0x137   : > { %v503_v63 = vadd.f32 %v502_v60, %v494_v62  ;;  %v518_v0 = vmul.f32 %v494_v62, %v494_v62  ;;  %v524_v3 = vadd.f32 %v523_v61, %v517_v59 }
 0x139   : > { %v504_v4 = vrot.slane %v503_v63, 4  ;;  %v525_v5 = vadd.f32 %v524_v3, %v518_v0 }
 0x13b   : > { %v505_v7 = vadd.f32 %v504_v4, %v503_v63  ;;  %v526_v8 = vrot.slane %v525_v5, 4 }
 0x13d   : > { %v506_v9 = vrot.slane %v505_v7, 2  ;;  %v527_v10 = vadd.f32 %v526_v8, %v525_v5 }
 0x13f   : > { %v507_v11 = vadd.f32 %v506_v9, %v505_v7  ;;  %v528_v12 = vrot.slane %v527_v10, 2 }
 0x141   : > { %v508_v2 = vrot.slane %v507_v11, 1  ;;  %v529_v48 = vadd.f32 %v528_v12, %v527_v10 }
 0x143   : > { %v509_v13 = vadd.f32 %v508_v2, %v507_v11  ;;  %v530_v14 = vrot.slane %v529_v48, 1 }
 0x145   : > { %v510_v15 = vmul.f32 0.015625, %v509_v13  ;;  %v531_v16 = vadd.f32 %v530_v14, %v529_v48 }
 0x147   : > { %v532_v21 = vmul.f32 0.015625, %v531_v16  ;;  %v533_v22 = vmul.f32 %v510_v15, %v510_v15  ;;  %v536_v35 = vsub.f32 %v975_v19, %v510_v15  ;;  %v537_v47 = vsub.f32 %v981_v27, %v510_v15 }
 0x148   : > { %v538_v31 = vsub.f32 %v979_v20, %v510_v15  ;;  %v539_v37 = vsub.f32 %v484_v51, %v510_v15  ;;  %v540_v39 = vsub.f32 %v977_v32, %v510_v15  ;;  %v541_v40 = vsub.f32 %v489_v18, %v510_v15 }
 0x149   : > { %v534_v23 = vsub.f32 %v532_v21, %v533_v22  ;;  %v542_v41 = vsub.f32 %v992_v50, %v510_v15  ;;  %v543_v42 = vsub.f32 %v494_v62, %v510_v15 }
 0x14b   : > { %v535_v24 = vmax.f32 %v534_v23, 0.0 }
 0x14d   : > { %v544_v25 = vadd.f32 1e-05, %v535_v24 }
 0x14f   : > { %779 = vrsqrt.f32 %v544_v25  ;;  %vm551_vm8 = vweird.f32 %v544_v25 }
 0x155   : > { %v780_v28 = vpop.eup %779 }
 0x156   : > { %v546_v29 = vmul.f32 %v780_v28, %v544_v25  ;;  %vm552_vm7 = vweird.f32 %v780_v28 }
 0x157   : > { %vm553_vm9 = vmor %vm551_vm8, %vm552_vm7 }
 0x158   : > { %v547_v33 = vmul.f32 %v780_v28, %v546_v29 }
 0x15a   : > { %v548_v30 = vmul.f32 0.5, %v547_v33 }
 0x15c   : > { %v549_v34 = vsub.f32 1.5, %v548_v30 }
 0x15e   : > { %v550_v36 = vmul.f32 %v780_v28, %v549_v34 }
 0x160   : > { %v554_v1 = vsel %vm553_vm9, %v780_v28, %v550_v36 }
 0x161   : > { %v555_v6 = vmul.f32 %v554_v1, %v536_v35  ;;  %v556_v38 = vmul.f32 %v554_v1, %v537_v47  ;;  %v557_v43 = vmul.f32 %v554_v1, %v538_v31  ;;  %v558_v19 = vmul.f32 %v554_v1, %v539_v37 }
 0x162   : > { %v559_v44 = vmul.f32 %v554_v1, %v540_v39  ;;  %v560_v45 = vmul.f32 %v554_v1, %v541_v40  ;;  %v561_v46 = vmul.f32 %v554_v1, %v542_v41  ;;  %v562_v27 = vmul.f32 %v554_v1, %v543_v42 }
 0x163   : > { %v563_v49 = vmax.f32 %v555_v6, 0.0  ;;  %v564_v20 = vmax.f32 %v556_v38, 0.0  ;;  %v565_v51 = vmax.f32 %v557_v43, 0.0  ;;  %v566_v52 = vmax.f32 %v558_v19, 0.0 }
 0x164   : > { %v567_v32 = vmax.f32 %v559_v44, 0.0  ;;  %v568_v50 = vmax.f32 %v560_v45, 0.0  ;;  %v569_v53 = vmax.f32 %v561_v46, 0.0  ;;  %v570_v17 = vmax.f32 %v562_v27, 0.0 }
 0x165   : > { %v719_v18 = vpack.c.bf16 %v564_v20, %v563_v49  ;;  %v724_v26 = vpack.c.bf16 %v566_v52, %v565_v51 }
 0x166   : > { %v729_v54 = vpack.c.bf16 %v568_v50, %v567_v32  ;;  %v734_v55 = vpack.c.bf16 %v570_v17, %v569_v53 }
 0x167   : > { %720 = vst [vmem:[%s180_s3] sm:$0xff] %v719_v18  }
 0x168   : > { %736 = vst [vmem:[%s180_s3 + $0x8] sm:$0xff] %v724_v26  }
 0x169   : > { %737 = vst [vmem:[%s180_s3 + $0x10] sm:$0xff] %v729_v54  }
 0x16a   : > { %738 = vst [vmem:[%s180_s3 + $0x18] sm:$0xff] %v734_v55  }
 0x16b PF: > { %s12_s11 = sadd.s32 1, %s803_s11   ;;  %s1023_s9 = smov %s799_s10 }
 0x16c   : > { %p9_p5 = scmp.ge.s32.totalorder %s12_s11, 4   ;;  %s1024_s10 = smov %s1026_s12 }
 0x16e   :  { %11 = sbr.rel (!%p9_p5) target bundleno = 2 (0x2), region = 61 }

</bundles_post_ra>
